<compile_context>
chip_gen: v6e
topology: v6e:2x2x1
jax: 0.10.0
libtpu: 0.0.40
codegen_flags: <defaults>
</compile_context>

<pallas_src>
import functools

import jax
import jax.numpy as jnp
from jax.experimental import pallas as pl
from jax.experimental.pallas import tpu as pltpu


LANE = 128              # TPU lane width: keep last dims multiples of this
DEFAULT_BLOCK_B = 2048  # batch-tile rows for the gridded / pipelined path


def _round_up(v: int, m: int) -> int:
    return ((v + m - 1) // m) * m


def _cdiv(a: int, b: int) -> int:
    return -(-a // b)


def _two_tower_kernel(xu_ref, xi_ref, w1u_ref, w1i_ref, b1_ref, w2_ref, b2_ref,
                      o_ref):
    """Fused two-tower MLP on one batch tile.

    xu_ref : [TB, DU]  raw user embeddings (cast to compute dtype in-kernel)
    xi_ref : [TB, DI]  raw item embeddings
    w1u_ref: [DU, H2]  user row-block of block-diag W1   (compute dtype)
    w1i_ref: [DI, H2]  item row-block of block-diag W1   (compute dtype)
    b1_ref : [1,  H2]  fused bias 1 (f32)
    w2_ref : [H2, N ]  block-diag W2                     (compute dtype)
    b2_ref : [1,  N ]  fused bias 2 (f32)
    o_ref  : [TB, N ]  [user_repr | item_repr], lane-dense (N % 128 == 0)
    """
    cd = w2_ref.dtype
    # Layer 1 on the MXU (f32 accumulation): two input dots sum into one
    # 128-wide hidden activation (user block in [:, :H], item in [:, H:2H]).
    h = jnp.dot(xu_ref[...].astype(cd), w1u_ref[...],
                preferred_element_type=jnp.float32)
    h = h + jnp.dot(xi_ref[...].astype(cd), w1i_ref[...],
                    preferred_element_type=jnp.float32)
    h = jnp.maximum(h + b1_ref[...], 0.0)
    # Dropout: eval-mode identity.
    # TODO(synk): training-mode dropout (stateful PRNG mask) is not implemented.
    y = jnp.dot(h.astype(cd), w2_ref[...], preferred_element_type=jnp.float32)
    o_ref[...] = (y + b2_ref[...]).astype(o_ref.dtype)


def init_linear_params(key, in_features, out_features):
    """PyTorch nn.Linear default init: U(-1/sqrt(in), 1/sqrt(in)).

    Weight is returned as [in_features, out_features] (transposed vs PyTorch
    storage) so the kernel computes y = x @ W + b directly.
    """
    kw, kb = jax.random.split(key)
    bound = 1.0 / (in_features ** 0.5)
    w = jax.random.uniform(kw, (in_features, out_features), jnp.float32,
                           -bound, bound)
    b = jax.random.uniform(kb, (1, out_features), jnp.float32, -bound, bound)
    return w, b


def build_fused_params(user_params, item_params, compute_dtype=jnp.bfloat16):
    """Pack both towers into block-diagonal, MXU/lane-aligned fused weights.

    W1 is kept as its two row blocks (user rows, item rows) so the kernel can
    consume the raw embeddings directly (no wrapper-side concat/pad of x).
    """
    uw1, ub1, uw2, ub2 = user_params
    iw1, ib1, iw2, ib2 = item_params
    du, h = uw1.shape
    di, _ = iw1.shape
    dout = uw2.shape[1]

    h2 = _round_up(2 * h, LANE)     # padded concat hidden dim
    n = _round_up(2 * dout, LANE)   # padded concat output dim (lane-dense)

    w1u = jnp.zeros((du, h2), jnp.float32).at[:, :h].set(uw1)
    w1i = jnp.zeros((di, h2), jnp.float32).at[:, h:2 * h].set(iw1)

    b1 = jnp.zeros((1, h2), jnp.float32)
    b1 = b1.at[:, :h].set(ub1).at[:, h:2 * h].set(ib1)

    w2 = jnp.zeros((h2, n), jnp.float32)
    w2 = w2.at[:h, :dout].set(uw2).at[h:2 * h, dout:2 * dout].set(iw2)

    b2 = jnp.zeros((1, n), jnp.float32)
    b2 = b2.at[:, :dout].set(ub2).at[:, dout:2 * dout].set(ib2)

    return (w1u.astype(compute_dtype), w1i.astype(compute_dtype), b1,
            w2.astype(compute_dtype), b2)


def two_tower_forward_packed(user_embed, item_embed, fused_params, *,
                             out_dtype=jnp.bfloat16, block_b=DEFAULT_BLOCK_B):
    """Fused forward returning the packed, lane-dense [B, N] output.

    Columns [:output_dim] hold the user representation and
    [output_dim:2*output_dim] the item representation (N = 2*output_dim rounded
    up to 128).  Preferred entry point for consumers that can take the packed
    layout — it avoids the post-kernel column split (an extra HBM pass).
    """
    w1u, w1i, b1, w2, b2 = fused_params
    b = user_embed.shape[0]
    du, h2 = w1u.shape
    di = w1i.shape[0]
    n = w2.shape[1]

    out_shape = jax.ShapeDtypeStruct((b, n), out_dtype)

    # Batch tile: aim for >=2 balanced blocks so both TensorCores on v7x get
    # work; rows per tile kept a multiple of 8 (sublane).  No batch padding:
    # a partial last block is handled by Pallas (OOB rows dropped on write,
    # rows are independent so valid rows are unaffected).
    tb = min(block_b, _round_up(_cdiv(b, 2), 8))
    num_blocks = _cdiv(b, tb)

    if num_blocks == 1:
        # Tiny-batch / latency path: no grid, whole problem resident in VMEM.
        vmem_spec = pl.BlockSpec(memory_space=pltpu.MemorySpace.VMEM)
        return pl.pallas_call(
            _two_tower_kernel,
            out_shape=out_shape,
            in_specs=[vmem_spec] * 7,
            out_specs=vmem_spec,
        )(user_embed, item_embed, w1u, w1i, b1, w2, b2)

    # Batched / throughput path: stream activation tiles over a parallel batch
    # grid; weights & biases use constant index_maps so they stay VMEM-resident
    # across all grid steps (double-buffering only touches the activations).
    in_bytes = b * (du * user_embed.dtype.itemsize
                    + di * item_embed.dtype.itemsize)
    w_bytes = sum(int(a.size) * a.dtype.itemsize for a in (w1u, w1i, b1, w2, b2))
    out_bytes = b * n * jnp.dtype(out_dtype).itemsize
    flops = 2 * b * (du * h2 + di * h2 + h2 * n)

    return pl.pallas_call(
        _two_tower_kernel,
        out_shape=out_shape,
        grid=(num_blocks,),
        in_specs=[
            pl.BlockSpec((tb, du), lambda i: (i, 0)),
            pl.BlockSpec((tb, di), lambda i: (i, 0)),
            pl.BlockSpec((du, h2), lambda i: (0, 0)),
            pl.BlockSpec((di, h2), lambda i: (0, 0)),
            pl.BlockSpec((1, h2), lambda i: (0, 0)),
            pl.BlockSpec((h2, n), lambda i: (0, 0)),
            pl.BlockSpec((1, n), lambda i: (0, 0)),
        ],
        out_specs=pl.BlockSpec((tb, n), lambda i: (i, 0)),
        compiler_params=pltpu.CompilerParams(
            # Batch tiles are independent -> shard across both TensorCores on
            # v7x; harmless on single-TC v5e/v6e.
            dimension_semantics=("parallel",),
        ),
        cost_estimate=pl.CostEstimate(
            flops=flops, transcendentals=0,
            bytes_accessed=in_bytes + w_bytes + out_bytes),
    )(user_embed, item_embed, w1u, w1i, b1, w2, b2)


def two_tower_forward(user_embed, item_embed, fused_params, *, output_dim,
                      out_dtype=jnp.bfloat16, block_b=DEFAULT_BLOCK_B):
    """API-parity forward: returns (user_repr, item_repr), each [B, output_dim].

    The column split is one extra XLA copy over the output; consumers that can
    take the packed layout should call `two_tower_forward_packed` instead.
    """
    out = two_tower_forward_packed(user_embed, item_embed, fused_params,
                                   out_dtype=out_dtype, block_b=block_b)
    return out[:, :output_dim], out[:, output_dim:2 * output_dim]


def reference_forward(user_embed, item_embed, user_params, item_params,
                      dtype=jnp.float32):
    """Plain-JAX reference (optionally with bf16 matmul operands)."""
    def tower(x, params):
        w1, b1, w2, b2 = params
        h = jnp.dot(x.astype(dtype), w1.astype(dtype),
                    preferred_element_type=jnp.float32) + b1
        h = jnp.maximum(h, 0.0)
        return jnp.dot(h.astype(dtype), w2.astype(dtype),
                       preferred_element_type=jnp.float32) + b2
    return tower(user_embed, user_params), tower(item_embed, item_params)


if __name__ == "__main__":
    B = 2
    USER_EMBED_DIM = 16
    ITEM_EMBED_DIM = 32
    HIDDEN_DIM = 64
    OUTPUT_DIM = 64

    root = jax.random.PRNGKey(0)
    k_u1, k_u2, k_i1, k_i2, k_xu, k_xi, k_bu, k_bi = jax.random.split(root, 8)

    user_params = (*init_linear_params(k_u1, USER_EMBED_DIM, HIDDEN_DIM),
                   *init_linear_params(k_u2, HIDDEN_DIM, OUTPUT_DIM))
    item_params = (*init_linear_params(k_i1, ITEM_EMBED_DIM, HIDDEN_DIM),
                   *init_linear_params(k_i2, HIDDEN_DIM, OUTPUT_DIM))
    fused_params = build_fused_params(user_params, item_params)

    fwd = jax.jit(functools.partial(two_tower_forward, output_dim=OUTPUT_DIM))
    fwd_packed = jax.jit(two_tower_forward_packed)

    # --- small-batch (latency) path: grid-free, whole problem VMEM-resident ---
    user_embed = jax.random.normal(k_xu, (B, USER_EMBED_DIM), jnp.float32)
    item_embed = jax.random.normal(k_xi, (B, ITEM_EMBED_DIM), jnp.float32)
    user_repr, item_repr = fwd(user_embed, item_embed, fused_params)
    jax.block_until_ready((user_repr, item_repr))

    assert user_repr.shape == (B, OUTPUT_DIM) and item_repr.shape == (B, OUTPUT_DIM)
    # Check against a bf16-operand reference (same matmul numerics; the kernel
    # output is additionally bf16-rounded, hence the tolerance).
    bu, bi = reference_forward(user_embed, item_embed, user_params, item_params,
                               dtype=jnp.bfloat16)
    assert jnp.allclose(user_repr.astype(jnp.float32), bu, atol=2e-2, rtol=2e-2)
    assert jnp.allclose(item_repr.astype(jnp.float32), bi, atol=2e-2, rtol=2e-2)
    # Looser sanity check against the full-f32 reference.
    fu, fi = reference_forward(user_embed, item_embed, user_params, item_params)
    assert jnp.allclose(user_repr.astype(jnp.float32), fu, atol=6e-2, rtol=6e-2)
    assert jnp.allclose(item_repr.astype(jnp.float32), fi, atol=6e-2, rtol=6e-2)

    # --- batched (throughput) path: 2 balanced "parallel" blocks of 2048 rows ---
    BB = 4096
    user_big = jax.random.normal(k_bu, (BB, USER_EMBED_DIM), jnp.float32)
    item_big = jax.random.normal(k_bi, (BB, ITEM_EMBED_DIM), jnp.float32)
    user_big_repr, item_big_repr = fwd(user_big, item_big, fused_params)
    jax.block_until_ready((user_big_repr, item_big_repr))

    assert user_big_repr.shape == (BB, OUTPUT_DIM)
    bub, bib = reference_forward(user_big, item_big, user_params, item_params,
                                 dtype=jnp.bfloat16)
    assert jnp.allclose(user_big_repr.astype(jnp.float32), bub, atol=2e-2, rtol=2e-2)
    assert jnp.allclose(item_big_repr.astype(jnp.float32), bib, atol=2e-2, rtol=2e-2)

    # Packed-output path (no post-kernel split) must agree with the split view.
    packed = fwd_packed(user_big, item_big, fused_params)
    jax.block_until_ready(packed)
    assert packed.shape == (BB, 2 * OUTPUT_DIM)
    assert jnp.array_equal(packed[:, :OUTPUT_DIM], user_big_repr)
    assert jnp.array_equal(packed[:, OUTPUT_DIM:2 * OUTPUT_DIM], item_big_repr)

    print("KERNEL_OK")
</pallas_src>

<mosaic_0001>
module attributes {stable_mosaic.version = 11 : i64} {
  func.func @_two_tower_kernel(%arg0: memref<2x16xf32, #tpu.memory_space<vmem>>, %arg1: memref<2x32xf32, #tpu.memory_space<vmem>>, %arg2: memref<16x128xbf16, #tpu.memory_space<vmem>>, %arg3: memref<32x128xbf16, #tpu.memory_space<vmem>>, %arg4: memref<1x128xf32, #tpu.memory_space<vmem>>, %arg5: memref<128x128xbf16, #tpu.memory_space<vmem>>, %arg6: memref<1x128xf32, #tpu.memory_space<vmem>>, %arg7: memref<2x128xbf16, #tpu.memory_space<vmem>>) attributes {dimension_semantics = [], scalar_prefetch = 0 : i64, scratch_operands = 0 : i64, tpu.core_type = #tpu.core_type<tc>} {
    %c0 = arith.constant 0 : index
    %c0_0 = arith.constant 0 : index
    %0 = vector.load %arg0[%c0, %c0_0] : memref<2x16xf32, #tpu.memory_space<vmem>>, vector<2x16xf32>
    %1 = arith.truncf %0 : vector<2x16xf32> to vector<2x16xbf16>
    %c0_1 = arith.constant 0 : index
    %c0_2 = arith.constant 0 : index
    %2 = vector.load %arg2[%c0_1, %c0_2] : memref<16x128xbf16, #tpu.memory_space<vmem>>, vector<16x128xbf16>
    %cst = arith.constant dense<0.000000e+00> : vector<2x128xf32>
    %3 = tpu.matmul %1, %2, %cst {dimension_numbers = #tpu.dot_dimension_numbers<[1], [0], [0], [1], [0, 0, 1, 1], [], []>} : vector<2x16xbf16>, vector<16x128xbf16>, vector<2x128xf32> -> vector<2x128xf32>
    %c0_3 = arith.constant 0 : index
    %c0_4 = arith.constant 0 : index
    %4 = vector.load %arg1[%c0_3, %c0_4] : memref<2x32xf32, #tpu.memory_space<vmem>>, vector<2x32xf32>
    %5 = arith.truncf %4 : vector<2x32xf32> to vector<2x32xbf16>
    %c0_5 = arith.constant 0 : index
    %c0_6 = arith.constant 0 : index
    %6 = vector.load %arg3[%c0_5, %c0_6] : memref<32x128xbf16, #tpu.memory_space<vmem>>, vector<32x128xbf16>
    %cst_7 = arith.constant dense<0.000000e+00> : vector<2x128xf32>
    %7 = tpu.matmul %5, %6, %cst_7 {dimension_numbers = #tpu.dot_dimension_numbers<[1], [0], [0], [1], [0, 0, 1, 1], [], []>} : vector<2x32xbf16>, vector<32x128xbf16>, vector<2x128xf32> -> vector<2x128xf32>
    %8 = arith.addf %3, %7 : vector<2x128xf32>
    %c0_8 = arith.constant 0 : index
    %c0_9 = arith.constant 0 : index
    %9 = vector.load %arg4[%c0_8, %c0_9] : memref<1x128xf32, #tpu.memory_space<vmem>>, vector<1x128xf32>
    %10 = vector.broadcast %9 : vector<1x128xf32> to vector<2x128xf32>
    %11 = arith.addf %8, %10 : vector<2x128xf32>
    %cst_10 = arith.constant 0.000000e+00 : f32
    %12 = vector.broadcast %cst_10 : f32 to vector<2x128xf32>
    %13 = arith.maximumf %11, %12 : vector<2x128xf32>
    %14 = arith.truncf %13 : vector<2x128xf32> to vector<2x128xbf16>
    %c0_11 = arith.constant 0 : index
    %c0_12 = arith.constant 0 : index
    %15 = vector.load %arg5[%c0_11, %c0_12] : memref<128x128xbf16, #tpu.memory_space<vmem>>, vector<128x128xbf16>
    %cst_13 = arith.constant dense<0.000000e+00> : vector<2x128xf32>
    %16 = tpu.matmul %14, %15, %cst_13 {dimension_numbers = #tpu.dot_dimension_numbers<[1], [0], [0], [1], [0, 0, 1, 1], [], []>} : vector<2x128xbf16>, vector<128x128xbf16>, vector<2x128xf32> -> vector<2x128xf32>
    %c0_14 = arith.constant 0 : index
    %c0_15 = arith.constant 0 : index
    %17 = vector.load %arg6[%c0_14, %c0_15] : memref<1x128xf32, #tpu.memory_space<vmem>>, vector<1x128xf32>
    %18 = vector.broadcast %17 : vector<1x128xf32> to vector<2x128xf32>
    %19 = arith.addf %16, %18 : vector<2x128xf32>
    %20 = arith.truncf %19 : vector<2x128xf32> to vector<2x128xbf16>
    %c0_16 = arith.constant 0 : index
    %c0_17 = arith.constant 0 : index
    %21 = vector.load %arg7[%c0_16, %c0_17] : memref<2x128xbf16, #tpu.memory_space<vmem>>, vector<2x128xbf16>
    tpu.vector_store %arg7[%c0_16, %c0_17], %20 {strides = array<i32>} : memref<2x128xbf16, #tpu.memory_space<vmem>>, vector<2x128xbf16>,
    return
  }
}

</mosaic_0001>

<bundles_post_ra>
// kernel: two_tower_forward.1
= control target key start
LH: loop header
LB: loop body
LE: loop exit
PB: predicated region body
PF: predicated region fallthrough
CT: control target
= control target key end

     0   :  { %12 = vsyncpa [#allocation3], 0  ;;  %s611_s0 = inlined_call_operand.hbm [shape: f32[2,16], index: 0, kind: input, shape index: {}]   ;;  %s612_s1 = inlined_call_operand.hbm [shape: f32[2,32], index: 1, kind: input, shape index: {}]   ;;  %s613_s2 = inlined_call_operand.hbm [shape: bf16[16,128], index: 2, kind: input, shape index: {}]   ;;  %s614_s3 = inlined_call_operand.hbm [shape: bf16[32,128], index: 3, kind: input, shape index: {}]   ;;  %s615_s4 = inlined_call_operand.vmem [shape: f32[1,128], index: 4, kind: input, shape index: {}]   ;;  %s616_s5 = inlined_call_operand.hbm [shape: bf16[128,128], index: 5, kind: input, shape index: {}]   ;;  %s617_s6 = inlined_call_operand.vmem [shape: f32[1,128], index: 6, kind: input, shape index: {}]   ;;  %s618_s7 = inlined_call_operand.vmem [shape: bf16[2,128], index: 7, kind: output, shape index: {}]  }
   0x1   :  { %13 = vsyncpa [#allocation5], 0 }
   0x2   :  { %14 = vsyncpa [#allocation8], 0  ;;  %s526_s24 = smov [#allocation4]  }
   0x3   :  { %s31_s25 = sshll.u32 %s526_s24, 4  ;;  %s32_s25 = int_to_ptr.vmem [resolvable:$true] %s31_s25 }
   0x4   :  { %s428_s26 = scalar_lea.vmem %s32_s25, 32  ;;  %p433_p1 = scmp.lt.s32.totalorder %s32_s25, %s32_s25 }
   0x5   :  { %p429_p0 = scmp.ne.s32.totalorder %s32_s25, %s428_s26  ;;  %p434_p2 = scmp.lt.s32.totalorder %s428_s26, %s428_s26 }
   0x7   :  { %p435_p3 = por %p434_p2, %p433_p1 }
   0x9   :  { %p436_p4 = pnand %p435_p3, %p429_p0 }
   0xb   :  { %439 = shalt.err (!%p436_p4)
}
   0xc   :  { %34 = dma.hbm_to_vmem [thread:$0]  %s612_s1, 32, %s32_s25, [#allocation5]  }
   0xd   :  { %s527_s29 = smov [#allocation7]   ;;  %s528_s8 = smov [#allocation2]  }
   0xe   :  { %s52_s30 = sshll.u32 %s527_s29, 4  ;;  %s21_s9 = sshll.u32 %s528_s8, 4  ;;  %s53_s30 = int_to_ptr.vmem [resolvable:$true] %s52_s30  ;;  %s22_s9 = int_to_ptr.vmem [resolvable:$true] %s21_s9 }
   0xf   :  { %s448_s10 = scalar_lea.vmem %s53_s30, 256  ;;  %p453_p6 = scmp.lt.s32.totalorder %s53_s30, %s53_s30 }
  0x10   :  { %p449_p5 = scmp.ne.s32.totalorder %s53_s30, %s448_s10  ;;  %p454_p7 = scmp.lt.s32.totalorder %s448_s10, %s448_s10 }
  0x12   :  { %p455_p8 = por %p454_p7, %p453_p6 }
  0x14   :  { %p456_p9 = pnand %p455_p8, %p449_p5 }
  0x16   :  { %459 = shalt.err (!%p456_p9)
}
  0x17   :  { %s529_s11 = smov 64   ;;  %s530_s12 = smov 4  }
  0x18   :  { %58 = dma.hbm_to_vmem [thread:$0]  %s614_s3, 256, %s53_s30, [#allocation8], %s529_s11, %s529_s11, %s530_s12  }
  0x19   :  { %s468_s1 = scalar_lea.vmem %s22_s9, 32  ;;  %p473_p11 = scmp.lt.s32.totalorder %s22_s9, %s22_s9 }
  0x1a   :  { %p469_p10 = scmp.ne.s32.totalorder %s22_s9, %s468_s1  ;;  %p474_p12 = scmp.lt.s32.totalorder %s468_s1, %s468_s1 }
  0x1c   :  { %p475_p13 = por %p474_p12, %p473_p11 }
  0x1e   :  { %p476_p0 = pnand %p475_p13, %p469_p10 }
  0x20   :  { %479 = shalt.err (!%p476_p0)
}
  0x21   :  { %24 = dma.hbm_to_vmem [thread:$0]  %s611_s0, 32, %s22_s9, [#allocation3]  }
  0x22   :  { %s531_s17 = smov [#allocation6]   ;;  %s532_s19 = smov [#allocation9]  }
  0x23   :  { %s40_s18 = sshll.u32 %s531_s17, 4  ;;  %s66_s20 = sshll.u32 %s532_s19, 4  ;;  %s41_s18 = int_to_ptr.vmem [resolvable:$true] %s40_s18  ;;  %s67_s20 = int_to_ptr.vmem [resolvable:$true] %s66_s20 }
  0x24   :  { %s488_s21 = scalar_lea.vmem %s41_s18, 128  ;;  %p493_p2 = scmp.lt.s32.totalorder %s41_s18, %s41_s18 }
  0x25   :  { %p489_p1 = scmp.ne.s32.totalorder %s41_s18, %s488_s21  ;;  %p494_p3 = scmp.lt.s32.totalorder %s488_s21, %s488_s21 }
  0x27   :  { %p495_p4 = por %p494_p3, %p493_p2 }
  0x29   :  { %p496_p5 = pnand %p495_p4, %p489_p1 }
  0x2b   :  { %499 = shalt.err (!%p496_p5)
}
  0x2c   :  { %46 = dma.hbm_to_vmem [thread:$0]  %s613_s2, 128, %s41_s18, [#allocation5], %s529_s11, %s529_s11, %s530_s12  }
  0x2d   :  { %s508_s0 = scalar_lea.vmem %s67_s20, 1024  ;;  %p513_p7 = scmp.lt.s32.totalorder %s67_s20, %s67_s20 }
  0x2e   :  { %p509_p6 = scmp.ne.s32.totalorder %s67_s20, %s508_s0  ;;  %p514_p8 = scmp.lt.s32.totalorder %s508_s0, %s508_s0 }
  0x30   :  { %p515_p9 = por %p514_p8, %p513_p7 }
  0x32   :  { %p516_p10 = pnand %p515_p9, %p509_p6 }
  0x34   :  { %519 = shalt.err (!%p516_p10)
}
  0x35   :  { %72 = dma.hbm_to_vmem [thread:$0]  %s616_s5, 1024, %s67_s20, [#allocation8], %s529_s11, %s529_s11, %s530_s12  }
  0x36   :  { %520 = dma.done.wait [#allocation3], 32  }
  0x37   :  { %521 = vsyncadd [#allocation3], 4294967264 }
  0x38   :  { %522 = dma.done.wait [#allocation5], 160  }
  0x39   :  { %523 = vsyncadd [#allocation5], 4294967136 }
  0x3a   :  { %524 = dma.done.wait [#allocation8], 1280  }
  0x3b   :  { %525 = vsyncadd [#allocation8], 4294966016  ;;  %v533_v0 = vmov 0.0   ;;  %vm534_vm0 = vmmov 0   ;;  %v409_v1 = vld [vmem:[#allocation7 + $0x8] sm:$0xff]   ;;  %v410_v2 = vld [vmem:[#allocation7] sm:$0xff]  }
  0x3c   :  { %366 = vmatprep.subr.bf16.mxu0 %v533_v0  ;;  %370 = vmatprep.mubr.msk.bf16.mxu0 %vm534_vm0, %v533_v0  ;;  %v95_v3 = vld [vmem:[#allocation4] sm:$0x3]  ;;  %v412_v4 = vld [vmem:[#allocation9 + $0x38] sm:$0xff]   ;;  %vm113_vm1 = vcmask 261120   ;;  %v411_v6 = vld [vmem:[#allocation6] sm:$0xff]   ;;  %vm163_vm2 = vcmask 130048  }
  0x3d   :  { %380 = vmatprep.subr.bf16.mxu1 %v533_v0  ;;  %396 = vmatprep.mubr.msk.bf16.mxu1 %vm534_vm0, %v533_v0  ;;  %v96_v5 = vpack.c.bf16 %v95_v3, %v95_v3  ;;  %v413_v7 = vld [vmem:[#allocation9 + $0x30] sm:$0xff]   ;;  %v91_v8 = vld [vmem:[#allocation2] sm:$0x3]  ;;  %v414_v9 = vld [vmem:[#allocation9 + $0x28] sm:$0xff]  }
  0x3e   :  { %367 = vmatpush3.bf16.msra.mxu0 %v409_v1  ;;  %381 = vmatpush3.bf16.msra.mxu1 %v412_v4  ;;  %v92_v10 = vpack.c.bf16 %v91_v8, %v91_v8  ;;  %v415_v11 = vld [vmem:[#allocation9 + $0x20] sm:$0xff]   ;;  %v416_v12 = vld [vmem:[#allocation9 + $0x18] sm:$0xff]   ;;  %v417_v13 = vld [vmem:[#allocation9 + $0x10] sm:$0xff]  }
  0x3f   :  { %368 = vmatprep.subr.bf16.mxu0 %v533_v0  ;;  %382 = vmatprep.subr.bf16.mxu1 %v533_v0  ;;  %v418_v14 = vld [vmem:[#allocation9 + $0x8] sm:$0xff]   ;;  %v419_v15 = vld [vmem:[#allocation9] sm:$0xff]  }
  0x40   :  { %v342_v21 = vld [vmem:[%s615_s4] ss:$0 sm:$0xff] }
  0x41   :  { %v343_v29 = vld [vmem:[%s617_s6] ss:$0 sm:$0xff] }
  0x42   :  { %369 = vmatpush3.bf16.msra.mxu0 %v410_v2  ;;  %383 = vmatpush3.bf16.msra.mxu1 %v413_v7 }
  0x43   :  { %374 = vmatprep.subr.bf16.mxu0 %v533_v0  ;;  %384 = vmatprep.subr.bf16.mxu1 %v533_v0 }
  0x45   :  { %371 = vmatmul.mubr.msk.bf16.vlgmr.msra.gmra.mxu0 %vm113_vm1, %v96_v5 }
  0x46   :  { %375 = vmatpush3.bf16.msra.mxu0 %v411_v6  ;;  %376 = vmatprep.mubr.msk.bf16.mxu0 %vm534_vm0, %v533_v0 }
  0x47   :  { %385 = vmatpush3.bf16.msra.mxu1 %v414_v9 }
  0x48   :  { %386 = vmatprep.subr.bf16.mxu1 %v533_v0 }
  0x4b   :  { %387 = vmatpush3.bf16.msra.mxu1 %v415_v11 }
  0x4c   :  { %388 = vmatprep.subr.bf16.mxu1 %v533_v0 }
  0x4d   :  { %377 = vmatmul.mubr.msk.bf16.vlgmr.msra.gmra.mxu0 %vm163_vm2, %v92_v10 }
  0x4f   :  { %389 = vmatpush3.bf16.msra.mxu1 %v416_v12 }
  0x50   :  { %390 = vmatprep.subr.bf16.mxu1 %v533_v0 }
  0x53   :  { %391 = vmatpush3.bf16.msra.mxu1 %v417_v13 }
  0x54   :  { %392 = vmatprep.subr.bf16.mxu1 %v533_v0 }
  0x57   :  { %393 = vmatpush3.bf16.msra.mxu1 %v418_v14 }
  0x58   :  { %394 = vmatprep.subr.bf16.mxu1 %v533_v0 }
  0x5b   :  { %395 = vmatpush3.bf16.msra.mxu1 %v419_v15 }
 0x105   :  { %v151_v16 = vpop.f32.mrf.mxu0 }
 0x107   :  { %v372_v17 = vpop.f32.mrf.mxu0 }
 0x109   :  { %v154_v18 = vpop.f32.mrf.mxu0 }
 0x10b   :  { %v373_v19 = vpop.f32.mrf.mxu0 }
 0x10d   :  { %v201_v20 = vpop.f32.mrf.mxu0 }
 0x10e   :  { %v202_v22 = vadd.f32 %v201_v20, %v151_v16 }
 0x10f   :  { %v378_v23 = vpop.f32.mrf.mxu0 }
 0x110   :  { %v214_v24 = vadd.f32 %v342_v21, %v202_v22 }
 0x111   :  { %v204_v25 = vpop.f32.mrf.mxu0 }
 0x112   :  { %v215_v26 = vmax.f32 %v214_v24, 0.0 }
 0x113   :  { %v379_v27 = vpop.f32.mrf.mxu0 }
 0x114   :  { %v216_v28 = vpack.c.bf16 %v215_v26, %v215_v26 }
 0x116   :  { %397 = vmatmul.mubr.bf16.vlgmr.msra.gmra.mxu1 %v216_v28 }
 0x1d6   :  { %v322_v30 = vpop.f32.mrf.mxu1 }
 0x1d7   :  { %v323_v31 = vadd.f32 %v343_v29, %v322_v30 }
 0x1d8   :  { %v398_v32 = vpop.f32.mrf.mxu1 }
 0x1d9   :  { %v328_v33 = vpack.c.bf16 %v323_v31, %v323_v31 }
 0x1da   :  { %v325_v34 = vpop.f32.mrf.mxu1 }
 0x1db   :  { %329 = vst [vmem:[%s618_s7] sm:$0x1] %v328_v33 }
 0x1dc   :  { %v399_v35 = vpop.f32.mrf.mxu1 }
 0x1dd   :  { %334 = vsyncpa [#allocation3], 1 }
 0x1de   :  { %335 = vsyncpa [#allocation5], 1 }
 0x1df   :  { %336 = vsyncpa [#allocation8], 1 }

</bundles_post_ra>
